<compile_context>
chip_gen: v7x
topology: tpu7x:2x2x1
jax: 0.10.0
libtpu: 0.0.40
codegen_flags: <defaults>
</compile_context>

<pallas_src>
import jax
import jax.numpy as jnp
from jax.experimental import pallas as pl
from jax.experimental.pallas import tpu as pltpu

_EPS = 0.1
_MIB = 1024 * 1024


def _round_up(a, b):
    return (a + b - 1) // b * b


def _vmem_capacity_bytes():
    """Physical VMEM per TensorCore (128 MiB v5e/v6e, 64 MiB v7x)."""
    try:
        cap = getattr(pltpu.get_tpu_info(), "vmem_capacity_bytes", None)
        if cap:
            return int(cap)
    except Exception:
        pass
    return 64 * _MIB  # conservative fallback (v7x-sized)


# --------------------------------------------------------------------------- #
# Kernel 1: A_tilde = softmax(A_prime, dim=1) * (1 - eps * sigmoid(M_prime)),
# computed once per forward call, in natural (in_dim, out_dim) layout so the
# softmax is a lane (last-axis) reduction.  Tiled over in_dim rows (rows are
# independent) so the param blocks stay bounded even for large params.
# --------------------------------------------------------------------------- #
def _a_tilde_kernel(a_ref, m_ref, o_ref):
    a = a_ref[...].astype(jnp.float32)
    m = m_ref[...].astype(jnp.float32)
    a_max = jnp.max(a, axis=-1, keepdims=True)
    ea = jnp.exp(a - a_max)
    denom = jnp.sum(ea, axis=-1, keepdims=True)
    # Runs once per call -> exact reciprocal is free and keeps 1e-5 parity.
    softmax_a = ea * pl.reciprocal(denom, approx=False)
    gate = 1.0 - _EPS * jax.nn.sigmoid(m)
    o_ref[...] = (softmax_a * gate).astype(o_ref.dtype)


# --------------------------------------------------------------------------- #
# Kernel 2: y = x @ A_tilde.T for one (batch, in_dim) output tile.
# The weight block is held in natural (tile_in, out_dim) layout; the
# contraction is the NT (last-with-last) dot_general, so the MXU-feed relayout
# happens on resident VMEM data and is hidden under the x/y DMAs of this
# HBM-bound kernel (no MXU-shape tuning needed: K = out_dim is tiny).
# --------------------------------------------------------------------------- #
def _matmul_kernel(x_ref, w_ref, o_ref):
    x = x_ref[...].astype(w_ref.dtype)  # in-kernel cast: VPU filler under DMA stalls
    y = jax.lax.dot_general(
        x, w_ref[...],
        dimension_numbers=(((1,), (1,)), ((), ())),   # contract out_dim with out_dim
        preferred_element_type=jnp.float32)
    o_ref[...] = y.astype(o_ref.dtype)


def f_lincons_forward(x, A_prime, M_prime, *, matmul_dtype=None,
                      tile_n_target=None, _force_tile_in=None):
    """Pallas implementation of f_LinCons.forward(x) = x @ effective_A().

    x: (N, out_dim) -> y: (N, in_dim).

    matmul_dtype: None (default) keeps x's dtype on the MXU (1e-5 parity with
      the PyTorch module for f32 inputs); pass jnp.bfloat16 to opt in to bf16
      MXU feeds with f32 accumulation.
    """
    n, out_dim = x.shape
    in_dim, out_dim2 = A_prime.shape
    assert out_dim == out_dim2 and M_prime.shape == (in_dim, out_dim)

    x_dtype = jnp.dtype(x.dtype)
    w_dtype = x_dtype if matmul_dtype is None else jnp.dtype(matmul_dtype)
    x_item = x_dtype.itemsize
    w_item = w_dtype.itemsize

    # ---- Generation-aware VMEM budget ---------------------------------------
    vmem_cap = _vmem_capacity_bytes()
    block_budget = vmem_cap // 2                 # leave half of VMEM as headroom
    if tile_n_target is None:
        # Bigger tiles on 128 MiB parts (v5e/v6e): fewer grid steps, larger DMAs.
        tile_n_target = 1024 if vmem_cap >= 96 * _MIB else 512

    # ---- Kernel 1: A_tilde (once per call) -----------------------------------
    def _prep_need(t):
        # two f32 param blocks + one output block, each double-buffered
        return t * out_dim * (2 * 4 + 2 * 4 + 2 * w_item)

    tile_r = in_dim
    while tile_r > 8 and _prep_need(tile_r) > block_budget:
        tile_r = max(8, (tile_r // 2) // 8 * 8)
    grid_r = pl.cdiv(in_dim, tile_r)

    a_tilde = pl.pallas_call(
        _a_tilde_kernel,
        out_shape=jax.ShapeDtypeStruct((in_dim, out_dim), w_dtype),
        grid_spec=pltpu.PrefetchScalarGridSpec(
            num_scalar_prefetch=0,
            grid=(grid_r,),
            in_specs=[
                pl.BlockSpec((tile_r, out_dim), lambda r: (r, 0)),
                pl.BlockSpec((tile_r, out_dim), lambda r: (r, 0)),
            ],
            out_specs=pl.BlockSpec((tile_r, out_dim), lambda r: (r, 0)),
        ),
        compiler_params=pltpu.CompilerParams(
            dimension_semantics=("parallel",)),
        cost_estimate=pl.CostEstimate(
            flops=6 * in_dim * out_dim,
            transcendentals=2 * in_dim * out_dim,
            bytes_accessed=in_dim * out_dim * (4 + 4 + w_item)),
    )(A_prime, M_prime)

    # ---- Kernel 2 tiling ------------------------------------------------------
    # Weight residency: keep A_tilde fully resident when it fits half the block
    # budget; otherwise add a second grid axis over in_dim (tile_in multiple of
    # 128 so the y-block last dim stays legal / masked on the remainder).
    if _force_tile_in is not None:
        tile_in = _force_tile_in
    elif in_dim <= 128 or out_dim * in_dim * w_item <= block_budget // 2:
        tile_in = in_dim
    else:
        tile_in = max(128, (block_budget // 2) // (2 * out_dim * w_item) // 128 * 128)
        if tile_in >= in_dim:
            tile_in = in_dim
    grid_in = pl.cdiv(in_dim, tile_in)

    resident_weight = (grid_in == 1)             # block index never changes
    n_w_bufs = 1 if resident_weight else 2       # Buffered(1) when resident
    w_block_bytes = n_w_bufs * out_dim * min(tile_in, in_dim) * w_item

    def _need(t):
        return (2 * t * out_dim * x_item         # x blocks (double-buffered)
                + w_block_bytes                  # weight block(s)
                + 2 * t * tile_in * x_item)      # y blocks (double-buffered)

    tile_n = min(n, tile_n_target)
    if tile_n < n:
        tile_n = _round_up(tile_n, 8)
    if n >= 256:
        # Ensure >=2 batch tiles so v7x megacore can shard the "parallel" axis;
        # per-step overhead (~0.35us) is negligible at this size.
        tile_n = min(tile_n, _round_up((n + 1) // 2, 8))
    while tile_n > 8 and _need(tile_n) > block_budget:
        tile_n = max(8, (tile_n // 2) // 8 * 8)
    grid_n = pl.cdiv(n, tile_n)

    vmem_limit = int(min(max(2 * _need(tile_n), 16 * _MIB), vmem_cap * 3 // 4))

    w_spec_kwargs = {}
    if resident_weight:
        # One buffer suffices for a block whose index never changes: halves the
        # resident weight's VMEM footprint (matters on v7x's 64 MiB).
        w_spec_kwargs["pipeline_mode"] = pl.Buffered(1)
    w_spec = pl.BlockSpec((tile_in, out_dim), lambda j, i: (j, 0), **w_spec_kwargs)

    y = pl.pallas_call(
        _matmul_kernel,
        out_shape=jax.ShapeDtypeStruct((n, in_dim), x.dtype),
        grid_spec=pltpu.PrefetchScalarGridSpec(
            num_scalar_prefetch=0,
            grid=(grid_in, grid_n),              # weight-stationary: in-tiles outer
            in_specs=[
                pl.BlockSpec((tile_n, out_dim), lambda j, i: (i, 0)),
                w_spec,
            ],
            out_specs=pl.BlockSpec((tile_n, tile_in), lambda j, i: (i, j)),
        ),
        compiler_params=pltpu.CompilerParams(
            dimension_semantics=("parallel", "parallel"),
            vmem_limit_bytes=vmem_limit),
        cost_estimate=pl.CostEstimate(
            flops=2 * n * out_dim * in_dim,
            transcendentals=0,
            bytes_accessed=(n * out_dim * x_item
                            + in_dim * out_dim * w_item
                            + n * in_dim * x_item)),
    )(x, a_tilde)
    return y


def f_lincons_ref(x, A_prime, M_prime):
    """Pure-JAX reference mirroring the PyTorch module."""
    M = 1.0 - _EPS * jax.nn.sigmoid(M_prime)
    A_tilde = jax.nn.softmax(A_prime, axis=1) * M
    return x @ A_tilde.T


if __name__ == "__main__":
    # forward does x @ (in_dim, out_dim).T, so x has trailing dim = output_dim
    # and the result has trailing dim = input_dim.
    input_dim, output_dim, batch = 32, 16, 8

    key = jax.random.PRNGKey(0)
    k_a, k_m, k_x, k_x2, k_a2, k_m2, k_x3 = jax.random.split(key, 7)
    A_prime = jax.random.uniform(k_a, (input_dim, output_dim), dtype=jnp.float32)
    M_prime = jax.random.uniform(k_m, (input_dim, output_dim), dtype=jnp.float32)
    x = jax.random.normal(k_x, (batch, output_dim), dtype=jnp.float32)

    y_ref = f_lincons_ref(x, A_prime, M_prime)

    # 1) Default (exact f32) path: 1e-5 parity with the PyTorch module.
    y = jax.block_until_ready(f_lincons_forward(x, A_prime, M_prime))
    assert y.shape == (batch, input_dim)
    assert jnp.allclose(y, y_ref, atol=1e-5, rtol=1e-5), (
        f"f32 max abs err = {jnp.max(jnp.abs(y - y_ref))}")

    # 2) Opt-in bf16 fast path (bf16 MXU feeds, f32 accumulation).
    ybf = jax.block_until_ready(
        f_lincons_forward(x, A_prime, M_prime, matmul_dtype=jnp.bfloat16))
    assert ybf.shape == (batch, input_dim)
    assert jnp.allclose(ybf, y_ref, atol=2e-2, rtol=2e-2), (
        f"bf16 max abs err = {jnp.max(jnp.abs(ybf - y_ref))}")

    # 3) Multi-tile batch with a non-divisible N: remainder handled in-kernel
    #    by masked partial blocks (no wrapper pad / slice).
    batch2 = 40
    x2 = jax.random.normal(k_x2, (batch2, output_dim), dtype=jnp.float32)
    y2_ref = f_lincons_ref(x2, A_prime, M_prime)
    y2 = jax.block_until_ready(
        f_lincons_forward(x2, A_prime, M_prime, tile_n_target=16))
    assert y2.shape == (batch2, input_dim)
    assert jnp.allclose(y2, y2_ref, atol=1e-5, rtol=1e-5), (
        f"tiled max abs err = {jnp.max(jnp.abs(y2 - y2_ref))}")

    # 4) Two-axis grid path (in_dim tiled in 128-lane blocks), exercised small.
    in2, out2, b3 = 256, 16, 24
    A2 = jax.random.uniform(k_a2, (in2, out2), dtype=jnp.float32)
    M2 = jax.random.uniform(k_m2, (in2, out2), dtype=jnp.float32)
    x3 = jax.random.normal(k_x3, (b3, out2), dtype=jnp.float32)
    y3_ref = f_lincons_ref(x3, A2, M2)
    y3 = jax.block_until_ready(f_lincons_forward(x3, A2, M2, _force_tile_in=128))
    assert y3.shape == (b3, in2)
    assert jnp.allclose(y3, y3_ref, atol=1e-5, rtol=1e-5), (
        f"in-tiled max abs err = {jnp.max(jnp.abs(y3 - y3_ref))}")

    print("KERNEL_OK")
</pallas_src>

<mosaic_0001>
module attributes {stable_mosaic.version = 11 : i64} {
  func.func @_a_tilde_kernel(%arg0: i32, %arg1: memref<32x16xf32, #tpu.memory_space<vmem>>, %arg2: memref<32x16xf32, #tpu.memory_space<vmem>>, %arg3: memref<32x16xf32, #tpu.memory_space<vmem>>) attributes {dimension_semantics = [#tpu.dimension_semantics<parallel>], iteration_bounds = array<i64: 1>, scalar_prefetch = 0 : i64, scratch_operands = 0 : i64, tpu.core_type = #tpu.core_type<tc>, window_params = [{transform_indices = @transform_0, window_bounds = array<i64: 32, 16>}, {transform_indices = @transform_1, window_bounds = array<i64: 32, 16>}, {transform_indices = @transform_2, window_bounds = array<i64: 32, 16>}]} {
    %c0 = arith.constant 0 : index
    %c0_0 = arith.constant 0 : index
    %0 = vector.load %arg1[%c0, %c0_0] : memref<32x16xf32, #tpu.memory_space<vmem>>, vector<32x16xf32>
    %c0_1 = arith.constant 0 : index
    %c0_2 = arith.constant 0 : index
    %1 = vector.load %arg2[%c0_1, %c0_2] : memref<32x16xf32, #tpu.memory_space<vmem>>, vector<32x16xf32>
    %cst = arith.constant dense<0xFF800000> : vector<32xf32>
    %2 = vector.multi_reduction <maximumf>, %0, %cst [1] : vector<32x16xf32> to vector<32xf32>
    %3 = vector.shape_cast %2 : vector<32xf32> to vector<32x1xf32>
    %4 = vector.broadcast %3 : vector<32x1xf32> to vector<32x16xf32>
    %5 = arith.subf %0, %4 : vector<32x16xf32>
    %6 = math.exp %5 : vector<32x16xf32>
    %cst_3 = arith.constant dense<0.000000e+00> : vector<32xf32>
    %7 = vector.multi_reduction <add>, %6, %cst_3 [1] : vector<32x16xf32> to vector<32xf32>
    %8 = vector.shape_cast %7 : vector<32xf32> to vector<32x1xf32>
    %9 = tpu.reciprocal %8 : vector<32x1xf32> -> vector<32x1xf32>
    %10 = vector.broadcast %9 : vector<32x1xf32> to vector<32x16xf32>
    %11 = arith.mulf %6, %10 : vector<32x16xf32>
    %12 = arith.negf %1 : vector<32x16xf32>
    %13 = math.exp %12 : vector<32x16xf32>
    %cst_4 = arith.constant 1.000000e+00 : f32
    %14 = vector.broadcast %cst_4 : f32 to vector<32x16xf32>
    %15 = arith.addf %14, %13 : vector<32x16xf32>
    %16 = arith.divf %14, %15 : vector<32x16xf32>
    %cst_5 = arith.constant 1.000000e-01 : f32
    %17 = vector.broadcast %cst_5 : f32 to vector<32x16xf32>
    %18 = arith.mulf %17, %16 : vector<32x16xf32>
    %cst_6 = arith.constant 1.000000e+00 : f32
    %19 = vector.broadcast %cst_6 : f32 to vector<32x16xf32>
    %20 = arith.subf %19, %18 : vector<32x16xf32>
    %21 = arith.mulf %11, %20 : vector<32x16xf32>
    %c0_7 = arith.constant 0 : index
    %c0_8 = arith.constant 0 : index
    %22 = vector.load %arg3[%c0_7, %c0_8] : memref<32x16xf32, #tpu.memory_space<vmem>>, vector<32x16xf32>
    tpu.vector_store %arg3[%c0_7, %c0_8], %21 {strides = array<i32>} : memref<32x16xf32, #tpu.memory_space<vmem>>, vector<32x16xf32>,
    return
  }
  func.func @transform_0(%arg0: i32) -> (i32, i32) {
    %c0_i32 = arith.constant 0 : i32
    %c0_i32_0 = arith.constant 0 : i32
    return %arg0, %c0_i32 : i32, i32
  }
  func.func @transform_1(%arg0: i32) -> (i32, i32) {
    %c0_i32 = arith.constant 0 : i32
    %c0_i32_0 = arith.constant 0 : i32
    return %arg0, %c0_i32 : i32, i32
  }
  func.func @transform_2(%arg0: i32) -> (i32, i32) {
    %c0_i32 = arith.constant 0 : i32
    %c0_i32_0 = arith.constant 0 : i32
    return %arg0, %c0_i32 : i32, i32
  }
}

</mosaic_0001>

<bundles_post_ra>
// kernel: tpu_custom_call.1
= control target key start
LH: loop header
LB: loop body
LE: loop exit
PB: predicated region body
PF: predicated region fallthrough
CT: control target
= control target key end

     0   :  { %vm19_vm0 = vcmask 130048   ;;  %s215_s0 = inlined_call_operand.vmem [shape: f32[32,16], index: 0, kind: input, shape index: {}]   ;;  %s216_s1 = inlined_call_operand.vmem [shape: f32[32,16], index: 1, kind: input, shape index: {}]   ;;  %s217_s2 = inlined_call_operand.vmem [shape: f32[32,16], index: 2, kind: output, shape index: {}]  }
   0x1   :  { %v11_v0 = vld [vmem:[%s215_s0] sm:$0xff]  ;;  %v13_v1 = vld [vmem:[%s215_s0 + $0x10] sm:$0xff]  ;;  %v12_v2 = vld [vmem:[%s215_s0 + $0x8] sm:$0xff] }
   0x2   :  { %v20_v3 = vsel %vm19_vm0, %v11_v0, -inf  ;;  %v26_v4 = vsel %vm19_vm0, %v13_v1, -inf  ;;  %v14_v5 = vld [vmem:[%s215_s0 + $0x18] sm:$0xff]  ;;  %v23_v6 = vsel %vm19_vm0, %v12_v2, -inf  ;;  %v15_v28 = vld [vmem:[%s216_s1] sm:$0xff]  ;;  %v16_v30 = vld [vmem:[%s216_s1 + $0x8] sm:$0xff] }
   0x3   :  { %21 = vmax.xlane.f32.xlu0 %v20_v3  ;;  %27 = vmax.xlane.f32.xlu1 %v26_v4  ;;  %v29_v7 = vsel %vm19_vm0, %v14_v5, -inf  ;;  %v108_v29 = vmul.f32 -1.442695, %v15_v28  ;;  %v17_v31 = vld [vmem:[%s216_s1 + $0x10] sm:$0xff]  ;;  %v109_v32 = vmul.f32 -1.442695, %v16_v30 }
   0x4   :  { %v18_v33 = vld [vmem:[%s216_s1 + $0x18] sm:$0xff]  ;;  %v110_v34 = vmul.f32 -1.442695, %v17_v31 }
   0x5   :  { %v111_v35 = vmul.f32 -1.442695, %v18_v33 }
   0x7   :  { %24 = vmax.xlane.f32.xlu0 %v23_v6  ;;  %30 = vmax.xlane.f32.xlu1 %v29_v7 }
  0x90   :  { %v22_v8 = vpop.xlane.xlu0 %21  ;;  %v28_v9 = vpop.xlane.xlu1 %27 }
  0x91   :  { %v32_v10 = vsub.f32 %v11_v0, %v22_v8  ;;  %v34_v11 = vsub.f32 %v13_v1, %v28_v9 }
  0x93   :  { %v36_v12 = vmul.f32 1.442695, %v32_v10  ;;  %v40_v13 = vmul.f32 1.442695, %v34_v11 }
  0x94   :  { %v25_v14 = vpop.xlane.xlu0 %24  ;;  %v31_v15 = vpop.xlane.xlu1 %30 }
  0x95   :  { %112 = vpow2.f32 %v36_v12  ;;  %v33_v16 = vsub.f32 %v12_v2, %v25_v14  ;;  %v35_v17 = vsub.f32 %v14_v5, %v31_v15 }
  0x96   :  { %114 = vpow2.f32 %v40_v13 }
  0x97   :  { %v38_v18 = vmul.f32 1.442695, %v33_v16  ;;  %v42_v19 = vmul.f32 1.442695, %v35_v17 }
  0x99   :  { %116 = vpow2.f32 %v38_v18 }
  0x9a   :  { %118 = vpow2.f32 %v42_v19 }
  0x9b   :  { %120 = vpow2.f32 %v108_v29 }
  0x9c   :  { %122 = vpow2.f32 %v109_v32 }
  0x9d   :  { %124 = vpow2.f32 %v110_v34 }
  0x9e   :  { %126 = vpow2.f32 %v111_v35 }
  0x9f   :  { %v113_v20 = vpop.eup %112 }
  0xa0   :  { %v175_v21 = vpop.eup %114  ;;  %v44_v22 = vsel %vm19_vm0, %v113_v20, 0.0 }
  0xa1   :  { %45 = vadd.xlane.f32.xlu0 %v44_v22  ;;  %v50_v23 = vsel %vm19_vm0, %v175_v21, 0.0 }
  0xa3   :  { %v117_v24 = vpop.eup %116 }
  0xa4   :  { %v180_v25 = vpop.eup %118  ;;  %v47_v26 = vsel %vm19_vm0, %v117_v24, 0.0 }
  0xa5   :  { %51 = vadd.xlane.f32.xlu0 %v50_v23  ;;  %48 = vadd.xlane.f32.xlu1 %v47_v26  ;;  %v53_v27 = vsel %vm19_vm0, %v180_v25, 0.0  ;;  %v121_v36 = vpop.eup %120 }
  0xa6   :  { %v76_v37 = vadd.f32 1.0, %v121_v36  ;;  %v123_v38 = vpop.eup %122 }
  0xa7   :  { %v125_v39 = vpop.eup %124  ;;  %v77_v41 = vadd.f32 1.0, %v123_v38 }
  0xa8   :  { %v127_v40 = vpop.eup %126  ;;  %128 = vrcp.f32 %v76_v37  ;;  %v78_v42 = vadd.f32 1.0, %v125_v39 }
  0xa9   :  { %54 = vadd.xlane.f32.xlu1 %v53_v27  ;;  %v79_v43 = vadd.f32 1.0, %v127_v40  ;;  %130 = vrcp.f32 %v77_v41 }
  0xaa   :  { %132 = vrcp.f32 %v78_v42 }
  0xab   :  { %134 = vrcp.f32 %v79_v43 }
  0xb2   :  { %v129_v45 = vpop.eup %128 }
  0xb3   :  { %v88_v48 = vmul.f32 0.1, %v129_v45  ;;  %v131_v49 = vpop.eup %130 }
  0xb4   :  { %v133_v50 = vpop.eup %132  ;;  %v89_v54 = vmul.f32 0.1, %v131_v49 }
  0xb5   :  { %v135_v52 = vpop.eup %134  ;;  %v92_v53 = vsub.f32 1.0, %v88_v48  ;;  %v90_v56 = vmul.f32 0.1, %v133_v50 }
  0xb6   :  { %v93_v59 = vsub.f32 1.0, %v89_v54  ;;  %v91_v60 = vmul.f32 0.1, %v135_v52 }
  0xb7   :  { %v94_v62 = vsub.f32 1.0, %v90_v56 }
  0xb8   :  { %v95_v3 = vsub.f32 1.0, %v91_v60 }
 0x12e   :  { %v46_v44 = vpop.xlane.xlu0 %45 }
 0x12f   :  { %136 = vrcp.f32 %v46_v44 }
 0x132   :  { %v49_v46 = vpop.xlane.xlu1 %48  ;;  %v52_v47 = vpop.xlane.xlu0 %51 }
 0x133   :  { %138 = vrcp.f32 %v49_v46 }
 0x134   :  { %140 = vrcp.f32 %v52_v47 }
 0x136   :  { %v55_v51 = vpop.xlane.xlu1 %54 }
 0x137   :  { %142 = vrcp.f32 %v55_v51 }
 0x139   :  { %v137_v55 = vpop.eup %136 }
 0x13a   :  { %v60_v57 = vmul.f32 %v137_v55, %v113_v20 }
 0x13c   :  { %v96_v58 = vmul.f32 %v92_v53, %v60_v57 }
 0x13d   :  { %v139_v61 = vpop.eup %138 }
 0x13e   :  { %v141_v63 = vpop.eup %140  ;;  %100 = vst.msk [vmem:[%s217_s2] sm:$0xff] %vm19_vm0, %v96_v58  ;;  %v61_v0 = vmul.f32 %v139_v61, %v117_v24 }
 0x13f   :  { %v62_v1 = vmul.f32 %v141_v63, %v175_v21 }
 0x140   :  { %v97_v2 = vmul.f32 %v93_v59, %v61_v0 }
 0x141   :  { %v143_v4 = vpop.eup %142  ;;  %v98_v5 = vmul.f32 %v94_v62, %v62_v1 }
 0x142   :  { %101 = vst.msk [vmem:[%s217_s2 + $0x8] sm:$0xff] %vm19_vm0, %v97_v2  ;;  %v63_v6 = vmul.f32 %v143_v4, %v180_v25 }
 0x143   :  { %102 = vst.msk [vmem:[%s217_s2 + $0x10] sm:$0xff] %vm19_vm0, %v98_v5 }
 0x144   :  { %v99_v7 = vmul.f32 %v95_v3, %v63_v6 }
 0x146   :  { %103 = vst.msk [vmem:[%s217_s2 + $0x18] sm:$0xff] %vm19_vm0, %v99_v7 }

</bundles_post_ra>
